<compile_context>
chip_gen: v7x
topology: tpu7x:2x2x1
jax: 0.10.0
libtpu: 0.0.40
codegen_flags: <defaults>
</compile_context>

<pallas_src>
import functools

import jax
import jax.numpy as jnp
from jax.experimental import pallas as pl
from jax.experimental.pallas import tpu as pltpu


def _sdpa_kernel(q_ref, k_ref, v_ref, out_ref, attn_ref, *, temperature):
    # Block refs: q (TBH, Dk), k (TBH, Lk, Dk), v (TBH, Lk, Dv).
    q = q_ref[...].astype(jnp.float32) * (1.0 / temperature)     # (TBH, Dk)
    k = k_ref[...].astype(jnp.float32)                            # (TBH, Lk, Dk)
    v = v_ref[...].astype(jnp.float32)                            # (TBH, Lk, Dv)

    # scores[b, l] = sum_d q[b, d] * k[b, l, d]   (VPU mul + XLU lane reduce)
    scores = jnp.sum(q[:, None, :] * k, axis=-1)                  # (TBH, Lk)

    # Numerically stable softmax over the key axis.
    m = jnp.max(scores, axis=-1, keepdims=True)
    p = jnp.exp(scores - m)
    s = jnp.sum(p, axis=-1, keepdims=True)
    attn = p * pl.reciprocal(s, approx=True)                      # (TBH, Lk)

    # out[b, d] = sum_l attn[b, l] * v[b, l, d]   (VPU mul + XLU sublane reduce)
    out = jnp.sum(attn[:, :, None] * v, axis=1)                   # (TBH, Dv)

    out_ref[...] = out.astype(out_ref.dtype)
    attn_ref[...] = attn.astype(attn_ref.dtype)


def _choose_tbh(BH, Lk, Dk, Dv, itemsize):
    """Pick the per-step head-block so the K+V block is ~4 MiB (double-buffered
    total stays well under the scoped-VMEM limit on v5e/v6e/v7x)."""
    target_bytes = 4 * 1024 * 1024
    per_head = max(Lk * (Dk + Dv) * itemsize, 1)
    tbh = max(1, target_bytes // per_head)
    if tbh >= BH or BH <= 8:
        return int(BH)                  # one block == full extent (always legal)
    tbh = max(8, (tbh // 8) * 8)        # keep the sublane dim a multiple of 8
    return int(min(tbh, BH))


def scaled_dot_product_attention(q, k, v, temperature):
    B, H, Dk = q.shape
    _, _, Lk, Dk_k = k.shape
    _, _, Lk_v, Dv = v.shape
    assert Dk == Dk_k and Lk == Lk_v

    BH = B * H
    qf = q.reshape(BH, Dk)
    kf = k.reshape(BH, Lk, Dk)
    vf = v.reshape(BH, Lk, Dv)

    itemsize = jnp.dtype(q.dtype).itemsize
    TBH = _choose_tbh(BH, Lk, Dk, Dv, itemsize)

    kernel = functools.partial(_sdpa_kernel, temperature=float(temperature))

    out_shapes = (
        jax.ShapeDtypeStruct((BH, Dv), q.dtype),   # output rows
        jax.ShapeDtypeStruct((BH, Lk), q.dtype),   # attn rows (input dtype)
    )

    grid_spec = pltpu.PrefetchScalarGridSpec(
        num_scalar_prefetch=0,
        grid=(pl.cdiv(BH, TBH),),
        in_specs=[
            pl.BlockSpec((TBH, Dk), lambda i: (i, 0)),
            pl.BlockSpec((TBH, Lk, Dk), lambda i: (i, 0, 0)),
            pl.BlockSpec((TBH, Lk, Dv), lambda i: (i, 0, 0)),
        ],
        out_specs=[
            pl.BlockSpec((TBH, Dv), lambda i: (i, 0)),
            pl.BlockSpec((TBH, Lk), lambda i: (i, 0)),
        ],
    )

    out_flat, attn_flat = pl.pallas_call(
        kernel,
        out_shape=out_shapes,
        grid_spec=grid_spec,
        compiler_params=pltpu.CompilerParams(
            dimension_semantics=("parallel",),
            vmem_limit_bytes=32 * 1024 * 1024,
        ),
    )(qf, kf, vf)

    out = out_flat.reshape(B, H, Dv)
    attn = attn_flat.reshape(B, H, 1, Lk)
    return out, attn


def _reference(q, k, v, temperature):
    # Pure-JAX reference mirroring the PyTorch forward (eval mode, no mask).
    attn = jnp.einsum("bhd,bhkd->bhk", q / temperature, k)
    attn = jax.nn.softmax(attn, axis=-1)
    out = jnp.einsum("bhk,bhkd->bhd", attn, v)
    return out, attn[:, :, None, :]


if __name__ == "__main__":
    B, H, Lk, Dk, Dv = 2, 4, 8, 32, 32
    temperature = float(Dk) ** 0.5

    key = jax.random.PRNGKey(0)
    kq, kk, kv = jax.random.split(key, 3)
    q = jax.random.normal(kq, (B, H, Dk), dtype=jnp.float32)
    k = jax.random.normal(kk, (B, H, Lk, Dk), dtype=jnp.float32)
    v = jax.random.normal(kv, (B, H, Lk, Dv), dtype=jnp.float32)

    out, attn = scaled_dot_product_attention(q, k, v, temperature)
    out = jax.block_until_ready(out)
    attn = jax.block_until_ready(attn)

    out_ref, attn_ref = _reference(q, k, v, temperature)
    # pl.reciprocal(approx=True) trades a few ulps on the softmax denominator.
    assert jnp.allclose(out, out_ref, atol=2e-3, rtol=2e-3)
    assert jnp.allclose(attn, attn_ref, atol=2e-3, rtol=2e-3)
    assert out.shape == (B, H, Dv) and attn.shape == (B, H, 1, Lk)

    print("KERNEL_OK")
</pallas_src>

<mosaic_0001>
module attributes {stable_mosaic.version = 11 : i64} {
  func.func @_sdpa_kernel(%arg0: i32, %arg1: memref<8x32xf32, #tpu.memory_space<vmem>>, %arg2: memref<8x8x32xf32, #tpu.memory_space<vmem>>, %arg3: memref<8x8x32xf32, #tpu.memory_space<vmem>>, %arg4: memref<8x32xf32, #tpu.memory_space<vmem>>, %arg5: memref<8x8xf32, #tpu.memory_space<vmem>>) attributes {dimension_semantics = [#tpu.dimension_semantics<parallel>], iteration_bounds = array<i64: 1>, scalar_prefetch = 0 : i64, scratch_operands = 0 : i64, tpu.core_type = #tpu.core_type<tc>, window_params = [{transform_indices = @transform_0, window_bounds = array<i64: 8, 32>}, {transform_indices = @transform_1, window_bounds = array<i64: 8, 8, 32>}, {transform_indices = @transform_2, window_bounds = array<i64: 8, 8, 32>}, {transform_indices = @transform_3, window_bounds = array<i64: 8, 32>}, {transform_indices = @transform_4, window_bounds = array<i64: 8, 8>}]} {
    %c0 = arith.constant 0 : index
    %c0_0 = arith.constant 0 : index
    %0 = vector.load %arg1[%c0, %c0_0] : memref<8x32xf32, #tpu.memory_space<vmem>>, vector<8x32xf32>
    %cst = arith.constant 0.176776692 : f32
    %1 = vector.broadcast %cst : f32 to vector<8x32xf32>
    %2 = arith.mulf %0, %1 : vector<8x32xf32>
    %c0_1 = arith.constant 0 : index
    %c0_2 = arith.constant 0 : index
    %c0_3 = arith.constant 0 : index
    %3 = vector.load %arg2[%c0_1, %c0_2, %c0_3] : memref<8x8x32xf32, #tpu.memory_space<vmem>>, vector<8x8x32xf32>
    %c0_4 = arith.constant 0 : index
    %c0_5 = arith.constant 0 : index
    %c0_6 = arith.constant 0 : index
    %4 = vector.load %arg3[%c0_4, %c0_5, %c0_6] : memref<8x8x32xf32, #tpu.memory_space<vmem>>, vector<8x8x32xf32>
    %5 = vector.shape_cast %2 : vector<8x32xf32> to vector<8x1x32xf32>
    %6 = vector.broadcast %5 : vector<8x1x32xf32> to vector<8x8x32xf32>
    %7 = arith.mulf %6, %3 : vector<8x8x32xf32>
    %cst_7 = arith.constant dense<0.000000e+00> : vector<8x8xf32>
    %8 = vector.multi_reduction <add>, %7, %cst_7 [2] : vector<8x8x32xf32> to vector<8x8xf32>
    %cst_8 = arith.constant dense<0xFF800000> : vector<8xf32>
    %9 = vector.multi_reduction <maximumf>, %8, %cst_8 [1] : vector<8x8xf32> to vector<8xf32>
    %10 = vector.shape_cast %9 : vector<8xf32> to vector<8x1xf32>
    %11 = vector.broadcast %10 : vector<8x1xf32> to vector<8x8xf32>
    %12 = arith.subf %8, %11 : vector<8x8xf32>
    %13 = math.exp %12 : vector<8x8xf32>
    %cst_9 = arith.constant dense<0.000000e+00> : vector<8xf32>
    %14 = vector.multi_reduction <add>, %13, %cst_9 [1] : vector<8x8xf32> to vector<8xf32>
    %15 = vector.shape_cast %14 : vector<8xf32> to vector<8x1xf32>
    %16 = tpu.reciprocal %15 {approx = true} : vector<8x1xf32> -> vector<8x1xf32>
    %17 = vector.broadcast %16 : vector<8x1xf32> to vector<8x8xf32>
    %18 = arith.mulf %13, %17 : vector<8x8xf32>
    %19 = vector.shape_cast %18 : vector<8x8xf32> to vector<8x8x1xf32>
    %20 = vector.broadcast %19 : vector<8x8x1xf32> to vector<8x8x32xf32>
    %21 = arith.mulf %20, %4 : vector<8x8x32xf32>
    %cst_10 = arith.constant dense<0.000000e+00> : vector<8x32xf32>
    %22 = vector.multi_reduction <add>, %21, %cst_10 [1] : vector<8x8x32xf32> to vector<8x32xf32>
    %c0_11 = arith.constant 0 : index
    %c0_12 = arith.constant 0 : index
    %23 = vector.load %arg4[%c0_11, %c0_12] : memref<8x32xf32, #tpu.memory_space<vmem>>, vector<8x32xf32>
    tpu.vector_store %arg4[%c0_11, %c0_12], %22 {strides = array<i32>} : memref<8x32xf32, #tpu.memory_space<vmem>>, vector<8x32xf32>,
    %c0_13 = arith.constant 0 : index
    %c0_14 = arith.constant 0 : index
    %24 = vector.load %arg5[%c0_13, %c0_14] : memref<8x8xf32, #tpu.memory_space<vmem>>, vector<8x8xf32>
    tpu.vector_store %arg5[%c0_13, %c0_14], %18 {strides = array<i32>} : memref<8x8xf32, #tpu.memory_space<vmem>>, vector<8x8xf32>,
    return
  }
  func.func @transform_0(%arg0: i32) -> (i32, i32) {
    %c0_i32 = arith.constant 0 : i32
    %c0_i32_0 = arith.constant 0 : i32
    return %arg0, %c0_i32 : i32, i32
  }
  func.func @transform_1(%arg0: i32) -> (i32, i32, i32) {
    %c0_i32 = arith.constant 0 : i32
    %c0_i32_0 = arith.constant 0 : i32
    %c0_i32_1 = arith.constant 0 : i32
    return %arg0, %c0_i32, %c0_i32_0 : i32, i32, i32
  }
  func.func @transform_2(%arg0: i32) -> (i32, i32, i32) {
    %c0_i32 = arith.constant 0 : i32
    %c0_i32_0 = arith.constant 0 : i32
    %c0_i32_1 = arith.constant 0 : i32
    return %arg0, %c0_i32, %c0_i32_0 : i32, i32, i32
  }
  func.func @transform_3(%arg0: i32) -> (i32, i32) {
    %c0_i32 = arith.constant 0 : i32
    %c0_i32_0 = arith.constant 0 : i32
    return %arg0, %c0_i32 : i32, i32
  }
  func.func @transform_4(%arg0: i32) -> (i32, i32) {
    %c0_i32 = arith.constant 0 : i32
    %c0_i32_0 = arith.constant 0 : i32
    return %arg0, %c0_i32 : i32, i32
  }
}

</mosaic_0001>

<bundles_post_ra>
// kernel: tpu_custom_call.1
= control target key start
LH: loop header
LB: loop body
LE: loop exit
PB: predicated region body
PF: predicated region fallthrough
CT: control target
= control target key end

     0   :  { %10 = vsyncpa [#allocation3], 0  ;;  %s1014_s0 = inlined_call_operand.hbm [shape: f32[8,32], index: 0, kind: input, shape index: {}]   ;;  %s1015_s1 = inlined_call_operand.hbm [shape: f32[8,8,32], index: 1, kind: input, shape index: {}]   ;;  %s1016_s2 = inlined_call_operand.hbm [shape: f32[8,8,32], index: 2, kind: input, shape index: {}]   ;;  %s1017_s3 = inlined_call_operand.hbm [shape: f32[8,32], index: 3, kind: output, shape index: {0}]   ;;  %s1018_s4 = inlined_call_operand.hbm [shape: f32[8,8], index: 4, kind: output, shape index: {1}]  }
   0x1   :  { %11 = vsyncpa [#allocation6], 0 }
   0x2   :  { %12 = vsyncpa [#allocation4], 0 }
   0x3   :  { %13 = vsyncpa [#allocation10], 0  ;;  %s788_s15 = smov [#allocation5]   ;;  %s670_s19 = scalar_lea.hbm %s1015_s1, 1024 }
   0x4   :  { %s29_s16 = sshll.u32 %s788_s15, 4  ;;  %p671_p0 = scmp.ne.s32.totalorder %s1015_s1, %s670_s19  ;;  %s30_s16 = int_to_ptr.vmem [resolvable:$true] %s29_s16 }
   0x5   :  { %p674_p1 = scmp.lt.u32.totalorder %s670_s19, %s1015_s1 }
   0x7   :  { %p676_p2 = pnand %p674_p1, %p671_p0 }
   0x9   :  { %679 = shalt.err (!%p676_p2)
}
   0xa   :  { %s680_s24 = scalar_lea.vmem %s30_s16, 1024  ;;  %p685_p4 = scmp.lt.s32.totalorder %s30_s16, %s30_s16 }
   0xb   :  { %p681_p3 = scmp.ne.s32.totalorder %s30_s16, %s680_s24  ;;  %p686_p5 = scmp.lt.s32.totalorder %s680_s24, %s680_s24 }
   0xd   :  { %p687_p6 = por %p686_p5, %p685_p4 }
   0xf   :  { %p688_p7 = pnand %p687_p6, %p681_p3 }
  0x11   :  { %691 = shalt.err (!%p688_p7)
}
  0x12   :  { %s789_s25 = smov 128   ;;  %s790_s26 = smov 8  }
  0x13   :  { %35 = dma.hbm_to_vmem [thread:$0]  %s1015_s1, 1024, %s30_s16, [#allocation6], %s789_s25, %s789_s25, %s790_s26  }
  0x14   :  { %s791_s29 = smov [#allocation2]   ;;  %s792_s5 = smov [#allocation7]  }
  0x15   :  { %s20_s30 = sshll.u32 %s791_s29, 4  ;;  %s41_s6 = sshll.u32 %s792_s5, 4  ;;  %s21_s30 = int_to_ptr.vmem [resolvable:$true] %s20_s30  ;;  %s42_s6 = int_to_ptr.vmem [resolvable:$true] %s41_s6 }
  0x16   :  { %s692_s9 = scalar_lea.hbm %s1014_s0, 128 }
  0x17   :  { %p693_p8 = scmp.ne.s32.totalorder %s1014_s0, %s692_s9  ;;  %p696_p9 = scmp.lt.u32.totalorder %s692_s9, %s1014_s0 }
  0x19   :  { %p698_p10 = pnand %p696_p9, %p693_p8 }
  0x1b   :  { %701 = shalt.err (!%p698_p10)
}
  0x1c   :  { %s702_s1 = scalar_lea.vmem %s21_s30, 128  ;;  %p707_p12 = scmp.lt.s32.totalorder %s21_s30, %s21_s30 }
  0x1d   :  { %p703_p11 = scmp.ne.s32.totalorder %s21_s30, %s702_s1  ;;  %p708_p13 = scmp.lt.s32.totalorder %s702_s1, %s702_s1 }
  0x1f   :  { %p709_p0 = por %p708_p13, %p707_p12 }
  0x21   :  { %p710_p1 = pnand %p709_p0, %p703_p11 }
  0x23   :  { %713 = shalt.err (!%p710_p1)
}
  0x24   :  { %23 = dma.hbm_to_vmem [thread:$0]  %s1014_s0, 128, %s21_s30, [#allocation3]  }
  0x25   :  { %s714_s18 = scalar_lea.hbm %s1016_s2, 1024 }
  0x26   :  { %p715_p2 = scmp.ne.s32.totalorder %s1016_s2, %s714_s18  ;;  %p718_p3 = scmp.lt.u32.totalorder %s714_s18, %s1016_s2 }
  0x28   :  { %p720_p4 = pnand %p718_p3, %p715_p2 }
  0x2a   :  { %723 = shalt.err (!%p720_p4)
}
  0x2b   :  { %s724_s23 = scalar_lea.vmem %s42_s6, 1024  ;;  %p729_p6 = scmp.lt.s32.totalorder %s42_s6, %s42_s6 }
  0x2c   :  { %p725_p5 = scmp.ne.s32.totalorder %s42_s6, %s724_s23  ;;  %p730_p7 = scmp.lt.s32.totalorder %s724_s23, %s724_s23 }
  0x2e   :  { %p731_p8 = por %p730_p7, %p729_p6 }
  0x30   :  { %p732_p9 = pnand %p731_p8, %p725_p5 }
  0x32   :  { %735 = shalt.err (!%p732_p9)
}
  0x33   :  { %47 = dma.hbm_to_vmem [thread:$0]  %s1016_s2, 1024, %s42_s6, [#allocation6], %s789_s25, %s789_s25, %s790_s26  }
  0x34   :  { %780 = dma.done.wait [#allocation3], 128  }
  0x35   :  { %781 = vsyncadd [#allocation3], 4294967168 }
  0x36   :  { %782 = dma.done.wait [#allocation6], 2048  }
  0x37   :  { %783 = vsyncadd [#allocation6], 4294965248  ;;  %v80_v0 = vlaneseq  ;;  %v793_v1 = vmov 1966171168   ;;  %v57_v8 = vld [vmem:[#allocation2] sm:$0xff]  ;;  %v59_v16 = vld [vmem:[#allocation5] sm:$0xff] }
  0x38   :  { %v78_v2 = vunpack.c.l.s4 %v793_v1  ;;  %v58_v9 = vmul.f32 0.17677669, %v57_v8  ;;  %vm173_vm0 = vcmask 261120   ;;  %v61_v21 = vld [vmem:[#allocation5 + $0x10] sm:$0xff]  ;;  %v60_v22 = vld [vmem:[#allocation5 + $0x8] sm:$0xff]  ;;  %v63_v28 = vld [vmem:[#allocation5 + $0x20] sm:$0xff] }
  0x39   :  { %v864_v3 = vshrl.u32 %v80_v0, 7  ;;  %v207_v4 = vand.u32 127, %v80_v0  ;;  %v62_v29 = vld [vmem:[#allocation5 + $0x18] sm:$0xff]  ;;  %v64_v38 = vld [vmem:[#allocation5 + $0x28] sm:$0xff]  ;;  %v65_v45 = vld [vmem:[#allocation5 + $0x30] sm:$0xff]  ;;  %vm240_vm1 = vcmask 1041409  }
  0x3a   :  { %v79_v5 = vunpack.c.0.s8 %v78_v2  ;;  %v76_v12 = vcombine.high %v58_v9, %v58_v9  ;;  %v66_v49 = vld [vmem:[#allocation5 + $0x38] sm:$0xff]  ;;  %vm242_vm2 = vcmask 1042434   ;;  %vm244_vm3 = vcmask 1043459   ;;  %s795_s2 = smov [#allocation9]  }
  0x3b   :  { %v867_v6 = vsub.s32 %v207_v4, %v864_v3  ;;  %v871_v11 = vsub.s32 0, %v864_v3  ;;  %vm246_vm4 = vcmask 1044484   ;;  %vm248_vm5 = vcmask 1045509   ;;  %s627_s25 = sshll.u32 %s795_s2, 4  ;;  %s628_s25 = int_to_ptr.vmem [resolvable:$true] %s627_s25 }
  0x3c   :  { %v82_v7 = vsub.s32 %v79_v5, %v864_v3  ;;  %vm250_vm6 = vcmask 1046534   ;;  %vm252_vm7 = vcmask 1047559   ;;  %vm255_vm8 = vcmask 64512   ;;  %s736_s26 = scalar_lea.vmem %s628_s25, 128  ;;  %p741_p11 = scmp.lt.s32.totalorder %s628_s25, %s628_s25 }
  0x3d   :  { %p737_p10 = scmp.ne.s32.totalorder %s628_s25, %s736_s26  ;;  %p742_p12 = scmp.lt.s32.totalorder %s736_s26, %s736_s26 }
  0x3e   :  { %v83_v10 = vrot.slane %v58_v9, %v82_v7  ;;  %v90_v15 = vrot.slane %v76_v12, %v82_v7 }
  0x3f   :  { %p743_p13 = por %p742_p12, %p741_p11 }
  0x40   :  { %v99_v13 = vrot.slane %v83_v10, %v82_v7  ;;  %v91_v14 = vcombine.high %v83_v10, %v83_v10  ;;  %v106_v20 = vrot.slane %v90_v15, %v82_v7  ;;  %v92_v23 = vcombine.high %v90_v15, %v90_v15 }
  0x41   :  { %p744_p0 = pnand %p743_p13, %p737_p10 }
  0x42   :  { %v128_v17 = vrot.slane %v99_v13, %v871_v11  ;;  %v121_v18 = vcombine.high %v99_v13, %v99_v13  ;;  %v113_v19 = vrot.slane %v91_v14, %v82_v7  ;;  %v144_v30 = vrot.slane %v106_v20, %v871_v11 }
  0x43   :  { %v120_v31 = vrot.slane %v92_v23, %v82_v7  ;;  %v122_v32 = vcombine.high %v106_v20, %v106_v20  ;;  %v266_v20 = vsub.s32 1, %v864_v3 }
  0x44   :  { %v165_v24 = vmul.f32 %v128_v17, %v59_v16  ;;  %v136_v25 = vrot.slane %v121_v18, %v871_v11  ;;  %v132_v26 = vrot.slane %v113_v19, %v871_v11  ;;  %v123_v27 = vcombine.high %v113_v19, %v113_v19 }
  0x45   :  { %v169_v37 = vmul.f32 %v144_v30, %v63_v28  ;;  %v148_v39 = vrot.slane %v120_v31, %v871_v11  ;;  %v124_v40 = vcombine.high %v120_v31, %v120_v31  ;;  %v152_v44 = vrot.slane %v122_v32, %v871_v11 }
  0x46   :  { %v174_v33 = vsel %vm173_vm0, %v165_v24, 0.0  ;;  %v167_v34 = vmul.f32 %v136_v25, %v61_v21  ;;  %v166_v35 = vmul.f32 %v132_v26, %v60_v22  ;;  %v140_v36 = vrot.slane %v123_v27, %v871_v11 }
  0x47   :  { %175 = vadd.xlane.f32.xlu0 %v174_v33  ;;  %v170_v47 = vmul.f32 %v148_v39, %v64_v38  ;;  %v156_v48 = vrot.slane %v124_v40, %v871_v11  ;;  %v186_v50 = vsel %vm173_vm0, %v169_v37, 0.0  ;;  %v171_v51 = vmul.f32 %v152_v44, %v65_v45 }
  0x48   :  { %v180_v41 = vsel %vm173_vm0, %v167_v34, 0.0  ;;  %v177_v42 = vsel %vm173_vm0, %v166_v35, 0.0  ;;  %v168_v43 = vmul.f32 %v140_v36, %v62_v29  ;;  %v794_v19 = vmov 0  }
  0x49   :  { %181 = vadd.xlane.f32.xlu1 %v180_v41  ;;  %v189_v52 = vsel %vm173_vm0, %v170_v47, 0.0  ;;  %v172_v53 = vmul.f32 %v156_v48, %v66_v49  ;;  %v192_v54 = vsel %vm173_vm0, %v171_v51, 0.0  ;;  %651 = vset.pattern.permute.xlu0 %v794_v19  ;;  %v270_v21 = vsub.s32 2, %v864_v3 }
  0x4a   :  { %v183_v46 = vsel %vm173_vm0, %v168_v43, 0.0  ;;  %650 = vset.pattern.permute.xlu1 %v794_v19  ;;  %v274_v22 = vsub.s32 3, %v864_v3  ;;  %v278_v27 = vsub.s32 4, %v864_v3  ;;  %v282_v34 = vsub.s32 5, %v864_v3 }
  0x4b   :  { %178 = vadd.xlane.f32.xlu0 %v177_v42  ;;  %v195_v55 = vsel %vm173_vm0, %v172_v53, 0.0  ;;  %v286_v38 = vsub.s32 6, %v864_v3  ;;  %v290_v42 = vsub.s32 7, %v864_v3 }
  0x4d   :  { %184 = vadd.xlane.f32.xlu1 %v183_v46 }
  0x4f   :  { %187 = vadd.xlane.f32.xlu0 %v186_v50 }
  0x51   :  { %190 = vadd.xlane.f32.xlu1 %v189_v52 }
  0x53   :  { %193 = vadd.xlane.f32.xlu0 %v192_v54 }
  0x55   :  { %196 = vadd.xlane.f32.xlu1 %v195_v55 }
  0xd4   :  { %v176_v56 = vpop.xlane.xlu0 %175 }
  0xd5   :  { %v211_v59 = vrot.slane %v176_v56, %v867_v6 }
  0xd6   :  { %v182_v57 = vpop.xlane.xlu1 %181 }
  0xd7   :  { %v219_v61 = vrot.slane %v182_v57, %v867_v6 }
  0xd8   :  { %v179_v58 = vpop.xlane.xlu0 %178 }
  0xd9   :  { %v215_v60 = vrot.slane %v179_v58, %v867_v6 }
  0xda   :  { %v185_v62 = vpop.xlane.xlu1 %184 }
  0xdb   :  { %v241_v63 = vsel %vm240_vm1, %v215_v60, %v211_v59  ;;  %v223_v0 = vrot.slane %v185_v62, %v867_v6 }
  0xdc   :  { %v243_v1 = vsel %vm242_vm2, %v219_v61, %v241_v63  ;;  %v188_v2 = vpop.xlane.xlu0 %187 }
  0xdd   :  { %v245_v4 = vsel %vm244_vm3, %v223_v0, %v243_v1  ;;  %v227_v5 = vrot.slane %v188_v2, %v867_v6 }
  0xde   :  { %v191_v7 = vpop.xlane.xlu1 %190 }
  0xdf   :  { %v247_v8 = vsel %vm246_vm4, %v227_v5, %v245_v4  ;;  %v231_v9 = vrot.slane %v191_v7, %v867_v6 }
  0xe0   :  { %v194_v10 = vpop.xlane.xlu0 %193 }
  0xe1   :  { %v235_v12 = vrot.slane %v194_v10, %v867_v6  ;;  %v249_v13 = vsel %vm248_vm5, %v231_v9, %v247_v8 }
  0xe2   :  { %v197_v14 = vpop.xlane.xlu1 %196 }
  0xe3   :  { %v239_v15 = vrot.slane %v197_v14, %v867_v6  ;;  %v251_v16 = vsel %vm250_vm6, %v235_v12, %v249_v13 }
  0xe5   :  { %v253_v17 = vsel %vm252_vm7, %v239_v15, %v251_v16 }
  0xe6   :  { %v256_v18 = vsel %vm255_vm8, %v253_v17, -inf }
  0xe7   :  { %257 = vmax.xlane.f32.xlu0 %v256_v18 }
 0x174   :  { %v258_v23 = vpop.xlane.xlu0 %257 }
 0x175   :  { %v263_v24 = vrot.slane %v258_v23, %v871_v11  ;;  %v267_v25 = vrot.slane %v258_v23, %v266_v20  ;;  %v271_v26 = vrot.slane %v258_v23, %v270_v21  ;;  %v275_v28 = vrot.slane %v258_v23, %v274_v22 }
 0x176   :  { %v279_v35 = vrot.slane %v258_v23, %v278_v27  ;;  %v283_v39 = vrot.slane %v258_v23, %v282_v34  ;;  %v287_v43 = vrot.slane %v258_v23, %v286_v38  ;;  %v291_v48 = vrot.slane %v258_v23, %v290_v42 }
 0x177   :  { %v300_v29 = vsub.f32 %v176_v56, %v263_v24  ;;  %v301_v30 = vsub.f32 %v179_v58, %v267_v25  ;;  %v302_v31 = vsub.f32 %v182_v57, %v271_v26  ;;  %v303_v36 = vsub.f32 %v185_v62, %v275_v28 }
 0x178   :  { %v304_v40 = vsub.f32 %v188_v2, %v279_v35  ;;  %v305_v44 = vsub.f32 %v191_v7, %v283_v39  ;;  %v306_v49 = vsub.f32 %v194_v10, %v287_v43  ;;  %v307_v52 = vsub.f32 %v197_v14, %v291_v48 }
 0x179   :  { %v308_v32 = vmul.f32 1.442695, %v300_v29  ;;  %v310_v33 = vmul.f32 1.442695, %v301_v30  ;;  %v312_v37 = vmul.f32 1.442695, %v302_v31 }
 0x17a   :  { %v314_v41 = vmul.f32 1.442695, %v303_v36  ;;  %v316_v45 = vmul.f32 1.442695, %v304_v40  ;;  %v318_v50 = vmul.f32 1.442695, %v305_v44 }
 0x17b   :  { %652 = vpow2.f32 %v308_v32  ;;  %v320_v53 = vmul.f32 1.442695, %v306_v49  ;;  %v322_v55 = vmul.f32 1.442695, %v307_v52 }
 0x17c   :  { %654 = vpow2.f32 %v310_v33 }
 0x17d   :  { %656 = vpow2.f32 %v312_v37 }
 0x17e   :  { %658 = vpow2.f32 %v314_v41 }
 0x17f   :  { %660 = vpow2.f32 %v316_v45 }
 0x180   :  { %662 = vpow2.f32 %v318_v50 }
 0x181   :  { %664 = vpow2.f32 %v320_v53 }
 0x182   :  { %666 = vpow2.f32 %v322_v55  ;;  %v71_v55 = vld [vmem:[#allocation7 + $0x20] sm:$0xff] }
 0x185   :  { %v653_v46 = vpop.eup %652 }
 0x186   :  { %v655_v47 = vpop.eup %654  ;;  %333 = vperm.xlu1 %650, %v653_v46  }
 0x187   :  { %336 = vperm.xlu0 %651, %v655_v47   ;;  %v657_v51 = vpop.eup %656 }
 0x188   :  { %v659_v54 = vpop.eup %658 }
 0x189   :  { %v661_v56 = vpop.eup %660 }
 0x18a   :  { %339 = vperm.xlu1 %650, %v657_v51   ;;  %v663_v57 = vpop.eup %662 }
 0x18b   :  { %v665_v58 = vpop.eup %664 }
 0x18c   :  { %v667_v59 = vpop.eup %666 }
 0x18e   :  { %342 = vperm.xlu1 %650, %v659_v54  }
 0x192   :  { %345 = vperm.xlu1 %650, %v661_v56  }
 0x196   :  { %348 = vperm.xlu1 %650, %v663_v57  }
 0x19a   :  { %351 = vperm.xlu1 %650, %v665_v58  }
 0x19e   :  { %354 = vperm.xlu1 %650, %v667_v59  }
 0x205   :  { %v334_v60 = vpop.permute.xlu1 %333 }
 0x206   :  { %v337_v0 = vpop.permute.xlu0 %336  ;;  %v359_v4 = vrot.slane %v334_v60, %v867_v6 }
 0x207   :  { %v363_v2 = vrot.slane %v337_v0, %v867_v6 }
 0x209   :  { %v340_v61 = vpop.permute.xlu1 %339  ;;  %v388_v10 = vsel %vm240_vm1, %v363_v2, %v359_v4 }
 0x20a   :  { %v367_v5 = vrot.slane %v340_v61, %v867_v6 }
 0x20c   :  { %v389_v13 = vsel %vm242_vm2, %v367_v5, %v388_v10 }
 0x20d   :  { %v343_v62 = vpop.permute.xlu1 %342 }
 0x20e   :  { %v371_v7 = vrot.slane %v343_v62, %v867_v6 }
 0x210   :  { %v390_v15 = vsel %vm244_vm3, %v371_v7, %v389_v13 }
 0x211   :  { %v346_v63 = vpop.permute.xlu1 %345 }
 0x212   :  { %v375_v8 = vrot.slane %v346_v63, %v867_v6  ;;  %v72_v63 = vld [vmem:[#allocation7 + $0x28] sm:$0xff] }
 0x214   :  { %v391_v16 = vsel %vm246_vm4, %v375_v8, %v390_v15  ;;  %v73_v15 = vld [vmem:[#allocation7 + $0x30] sm:$0xff] }
 0x215   :  { %v349_v1 = vpop.permute.xlu1 %348 }
 0x216   :  { %v379_v12 = vrot.slane %v349_v1, %v867_v6 }
 0x218   :  { %v392_v18 = vsel %vm248_vm5, %v379_v12, %v391_v16 }
 0x219   :  { %v352_v9 = vpop.permute.xlu1 %351 }
 0x21a   :  { %v383_v14 = vrot.slane %v352_v9, %v867_v6 }
 0x21c   :  { %v393_v23 = vsel %vm250_vm6, %v383_v14, %v392_v18 }
 0x21d   :  { %v355_v17 = vpop.permute.xlu1 %354 }
 0x21e   :  { %v387_v19 = vrot.slane %v355_v17, %v867_v6 }
 0x220   :  { %v394_v24 = vsel %vm252_vm7, %v387_v19, %v393_v23 }
 0x221   :  { %v396_v25 = vsel %vm255_vm8, %v394_v24, 0.0 }
 0x222   :  { %397 = vadd.xlane.f32.xlu1 %v396_v25 }
 0x2af   :  { %v398_v26 = vpop.xlane.xlu1 %397 }
 0x2b0   :  { %668 = vrcp.f32 %v398_v26 }
 0x2ba   :  { %v669_v28 = vpop.eup %668 }
 0x2bb   :  { %v404_v29 = vrot.slane %v669_v28, %v871_v11  ;;  %v408_v31 = vrot.slane %v669_v28, %v266_v20  ;;  %v412_v33 = vrot.slane %v669_v28, %v270_v21  ;;  %v416_v36 = vrot.slane %v669_v28, %v274_v22 }
 0x2bc   :  { %v420_v39 = vrot.slane %v669_v28, %v278_v27  ;;  %v424_v20 = vrot.slane %v669_v28, %v282_v34  ;;  %v428_v21 = vrot.slane %v669_v28, %v286_v38  ;;  %v432_v22 = vrot.slane %v669_v28, %v290_v42  ;;  %v68_v27 = vld [vmem:[#allocation7 + $0x8] sm:$0xff] }
 0x2bd   :  { %v441_v30 = vmul.f32 %v653_v46, %v404_v29  ;;  %v442_v32 = vmul.f32 %v655_v47, %v408_v31  ;;  %v443_v35 = vmul.f32 %v657_v51, %v412_v33  ;;  %v444_v37 = vmul.f32 %v659_v54, %v416_v36  ;;  %v67_v46 = vld [vmem:[#allocation7] sm:$0xff]  ;;  %v69_v47 = vld [vmem:[#allocation7 + $0x10] sm:$0xff]  ;;  %v70_v51 = vld [vmem:[#allocation7 + $0x18] sm:$0xff] }
 0x2be   :  { %v445_v11 = vmul.f32 %v661_v56, %v420_v39  ;;  %v446_v40 = vmul.f32 %v663_v57, %v424_v20  ;;  %v447_v41 = vmul.f32 %v665_v58, %v428_v21  ;;  %v448_v43 = vmul.f32 %v667_v59, %v432_v22 }
 0x2bf   :  { %451 = vperm.xlu0 %651, %v441_v30  }
 0x2c3   :  { %456 = vperm.xlu0 %651, %v442_v32  }
 0x2c7   :  { %461 = vperm.xlu0 %651, %v443_v35  }
 0x2cb   :  { %466 = vperm.xlu0 %651, %v444_v37   ;;  %v74_v37 = vld [vmem:[#allocation7 + $0x38] sm:$0xff] }
 0x2cf   :  { %471 = vperm.xlu0 %651, %v445_v11  }
 0x2d3   :  { %476 = vperm.xlu0 %651, %v446_v40  }
 0x2d7   :  { %481 = vperm.xlu0 %651, %v447_v41  }
 0x2db   :  { %486 = vperm.xlu0 %651, %v448_v43  }
 0x33e   :  { %v452_v44 = vpop.permute.xlu0 %451 }
 0x33f   :  { %v489_v34 = vmul.f32 %v452_v44, %v67_v46  ;;  %v573_v10 = vrot.slane %v452_v44, %v867_v6 }
 0x341   :  { %v497_v52 = vsel %vm173_vm0, %v489_v34, 0.0 }
 0x342   :  { %v457_v45 = vpop.permute.xlu0 %456  ;;  %v498_v56 = vrot.slane %v497_v52, 4 }
 0x343   :  { %v490_v48 = vmul.f32 %v457_v45, %v68_v27  ;;  %v577_v8 = vrot.slane %v457_v45, %v867_v6 }
 0x344   :  { %v499_v0 = vadd.f32 %v498_v56, %v497_v52 }
 0x345   :  { %v504_v38 = vsel %vm173_vm0, %v490_v48, 0.0  ;;  %v602_v28 = vsel %vm240_vm1, %v577_v8, %v573_v10 }
 0x346   :  { %v462_v49 = vpop.permute.xlu0 %461  ;;  %v505_v54 = vrot.slane %v504_v38, 4  ;;  %v500_v16 = vrot.slane %v499_v0, 2 }
 0x347   :  { %v491_v50 = vmul.f32 %v462_v49, %v69_v47  ;;  %v581_v13 = vrot.slane %v462_v49, %v867_v6 }
 0x348   :  { %v506_v62 = vadd.f32 %v505_v54, %v504_v38  ;;  %v501_v39 = vadd.f32 %v500_v16, %v499_v0 }
 0x349   :  { %v511_v3 = vsel %vm173_vm0, %v491_v50, 0.0  ;;  %v603_v33 = vsel %vm242_vm2, %v581_v13, %v602_v28 }
 0x34a   :  { %v467_v42 = vpop.permute.xlu0 %466  ;;  %v512_v57 = vrot.slane %v511_v3, 4  ;;  %v507_v12 = vrot.slane %v506_v62, 2 }
 0x34b   :  { %v492_v53 = vmul.f32 %v467_v42, %v70_v51  ;;  %v585_v18 = vrot.slane %v467_v42, %v867_v6 }
 0x34c   :  { %v513_v1 = vadd.f32 %v512_v57, %v511_v3  ;;  %v508_v32 = vadd.f32 %v507_v12, %v506_v62  ;;  %v502_v3 = vrot.slane %v501_v39, 1 }
 0x34d   :  { %v518_v58 = vsel %vm173_vm0, %v492_v53, 0.0  ;;  %v604_v20 = vsel %vm244_vm3, %v585_v18, %v603_v33 }
 0x34e   :  { %v519_v59 = vrot.slane %v518_v58, 4  ;;  %v472_v60 = vpop.permute.xlu0 %471  ;;  %v514_v17 = vrot.slane %v513_v1, 2  ;;  %v509_v48 = vrot.slane %v508_v32, 1 }
 0x34f   :  { %v493_v61 = vmul.f32 %v472_v60, %v71_v55  ;;  %v589_v24 = vrot.slane %v472_v60, %v867_v6 }
 0x350   :  { %v520_v4 = vadd.f32 %v519_v59, %v518_v58  ;;  %v515_v11 = vadd.f32 %v514_v17, %v513_v1 }
 0x351   :  { %v525_v2 = vsel %vm173_vm0, %v493_v61, 0.0  ;;  %v605_v41 = vsel %vm246_vm4, %v589_v24, %v604_v20 }
 0x352   :  { %v526_v5 = vrot.slane %v525_v2, 4  ;;  %v477_v7 = vpop.permute.xlu0 %476  ;;  %v521_v23 = vrot.slane %v520_v4, 2  ;;  %v516_v51 = vrot.slane %v515_v11, 1 }
 0x353   :  { %v494_v9 = vmul.f32 %v477_v7, %v72_v63  ;;  %v593_v30 = vrot.slane %v477_v7, %v867_v6 }
 0x354   :  { %v527_v14 = vadd.f32 %v526_v5, %v525_v2  ;;  %v522_v21 = vadd.f32 %v521_v23, %v520_v4 }
 0x355   :  { %v532_v19 = vsel %vm173_vm0, %v494_v9, 0.0  ;;  %v606_v45 = vsel %vm248_vm5, %v593_v30, %v605_v41 }
 0x356   :  { %v533_v25 = vrot.slane %v532_v19, 4  ;;  %v482_v26 = vpop.permute.xlu0 %481  ;;  %v528_v29 = vrot.slane %v527_v14, 2  ;;  %v523_v42 = vrot.slane %v522_v21, 1 }
 0x357   :  { %v495_v31 = vmul.f32 %v482_v26, %v73_v15  ;;  %v597_v36 = vrot.slane %v482_v26, %v867_v6 }
 0x358   :  { %v534_v35 = vadd.f32 %v533_v25, %v532_v19  ;;  %v529_v27 = vadd.f32 %v528_v29, %v527_v14 }
 0x359   :  { %v539_v40 = vsel %vm173_vm0, %v495_v31, 0.0  ;;  %v607_v50 = vsel %vm250_vm6, %v597_v36, %v606_v45 }
 0x35a   :  { %v535_v22 = vrot.slane %v534_v35, 2  ;;  %v540_v43 = vrot.slane %v539_v40, 4  ;;  %v487_v44 = vpop.permute.xlu0 %486  ;;  %v530_v55 = vrot.slane %v529_v27, 1 }
 0x35b   :  { %v496_v46 = vmul.f32 %v487_v44, %v74_v37  ;;  %v601_v47 = vrot.slane %v487_v44, %v867_v6 }
 0x35c   :  { %v536_v34 = vadd.f32 %v535_v22, %v534_v35  ;;  %v541_v49 = vadd.f32 %v540_v43, %v539_v40 }
 0x35d   :  { %v546_v38 = vsel %vm173_vm0, %v496_v46, 0.0  ;;  %v608_v52 = vsel %vm252_vm7, %v601_v47, %v607_v50 }
 0x35e   :  { %v542_v53 = vrot.slane %v541_v49, 2  ;;  %v547_v54 = vrot.slane %v546_v38, 4  ;;  %610 = vst.msk [vmem:[#allocation9] sm:$0xff] %vm255_vm8, %v608_v52 }
 0x35f   :  { %747 = shalt.err (!%p744_p0)
}
 0x360   :  { %s748_s29 = scalar_lea.hbm %s1018_s4, 128 }
 0x361   :  { %p749_p1 = scmp.ne.s32.totalorder %s1018_s4, %s748_s29  ;;  %p752_p2 = scmp.lt.u32.totalorder %s748_s29, %s1018_s4 }
 0x363   :  { %p754_p3 = pnand %p752_p2, %p749_p1 }
 0x365   :  { %757 = shalt.err (!%p754_p3)
}
 0x366   :  { %630 = dma.vmem_to_hbm [thread:$0]  %s628_s25, 128, %s1018_s4, [#allocation10]   ;;  %v510_v6 = vadd.f32 %v509_v48, %v508_v32  ;;  %v537_v56 = vrot.slane %v536_v34, 1  ;;  %v543_v57 = vadd.f32 %v542_v53, %v541_v49  ;;  %v548_v58 = vadd.f32 %v547_v54, %v546_v38 }
 0x367   :  { %v517_v59 = vadd.f32 %v516_v51, %v515_v11  ;;  %v503_v60 = vadd.f32 %v502_v3, %v501_v39  ;;  %v524_v61 = vadd.f32 %v523_v42, %v522_v21  ;;  %v531_v0 = vadd.f32 %v530_v55, %v529_v27  ;;  %s796_s4 = smov [#allocation8]  }
 0x368   :  { %v544_v62 = vrot.slane %v543_v57, 1  ;;  %v549_v63 = vrot.slane %v548_v58, 2  ;;  %v538_v2 = vadd.f32 %v537_v56, %v536_v34  ;;  %s617_s10 = sshll.u32 %s796_s4, 4  ;;  %s618_s10 = int_to_ptr.vmem [resolvable:$true] %s617_s10 }
 0x369   :  { %v561_v1 = vsel %vm240_vm1, %v510_v6, %v503_v60  ;;  %s758_s11 = scalar_lea.vmem %s618_s10, 128  ;;  %p763_p5 = scmp.lt.s32.totalorder %s618_s10, %s618_s10 }
 0x36a   :  { %v550_v4 = vadd.f32 %v549_v63, %v548_v58  ;;  %v562_v5 = vsel %vm242_vm2, %v517_v59, %v561_v1  ;;  %v545_v7 = vadd.f32 %v544_v62, %v543_v57  ;;  %p759_p4 = scmp.ne.s32.totalorder %s618_s10, %s758_s11  ;;  %p764_p6 = scmp.lt.s32.totalorder %s758_s11, %s758_s11 }
 0x36b   :  { %v563_v9 = vsel %vm244_vm3, %v524_v61, %v562_v5 }
 0x36c   :  { %v551_v8 = vrot.slane %v550_v4, 1  ;;  %v564_v10 = vsel %vm246_vm4, %v531_v0, %v563_v9  ;;  %p765_p7 = por %p764_p6, %p763_p5 }
 0x36d   :  { %v565_v13 = vsel %vm248_vm5, %v538_v2, %v564_v10 }
 0x36e   :  { %v552_v12 = vadd.f32 %v551_v8, %v550_v4  ;;  %v566_v14 = vsel %vm250_vm6, %v545_v7, %v565_v13  ;;  %p766_p8 = pnand %p765_p7, %p759_p4 }
 0x370   :  { %v567_v15 = vsel %vm252_vm7, %v552_v12, %v566_v14 }
 0x371   :  { %569 = vst.msk [vmem:[#allocation8] sm:$0xff] %vm173_vm0, %v567_v15 }
 0x372   :  { %769 = shalt.err (!%p766_p8)
}
 0x373   :  { %s770_s1 = scalar_lea.hbm %s1017_s3, 128 }
 0x374   :  { %p771_p9 = scmp.ne.s32.totalorder %s1017_s3, %s770_s1  ;;  %p774_p10 = scmp.lt.u32.totalorder %s770_s1, %s1017_s3 }
 0x376   :  { %p776_p11 = pnand %p774_p10, %p771_p9 }
 0x378   :  { %779 = shalt.err (!%p776_p11)
}
 0x379   :  { %620 = dma.vmem_to_hbm [thread:$0]  %s618_s10, 128, %s1017_s3, [#allocation4]  }
 0x37a   :  { %784 = dma.done.wait [#allocation4], 128  }
 0x37b   :  { %785 = vsyncadd [#allocation4], 4294967168 }
 0x37c   :  { %786 = dma.done.wait [#allocation10], 128  }
 0x37d   :  { %787 = vsyncadd [#allocation10], 4294967168 }
 0x37e   :  { %637 = vsyncpa [#allocation3], 1 }
 0x37f   :  { %638 = vsyncpa [#allocation6], 1 }
 0x380   :  { %639 = vsyncpa [#allocation4], 1 }
 0x381   :  { %640 = vsyncpa [#allocation10], 1 }

</bundles_post_ra>
